<compile_context>
chip_gen: v7x
topology: tpu7x:2x2x1
jax: 0.10.0
libtpu: 0.0.40
codegen_flags: <defaults>
</compile_context>

<pallas_src>
import numpy as np
from functools import partial

import jax
import jax.numpy as jnp
from jax import lax
from jax.experimental import pallas as pl
from jax.experimental.pallas import tpu as pltpu


# ---------------------------------------------------------------------------
# Per-window VMEM tile shape (S, L), S*L == k*k*C, preferring lane-dense L.
# ---------------------------------------------------------------------------
def _pick_window_tile(k2, C):
    k2c = k2 * C
    if C % 128 == 0:
        return k2, C                      # lane-dense, k*k sublanes
    for S in range(k2c // 128, 0, -1):    # largest S with L = k2c/S a 128-multiple
        if k2c % S == 0 and (k2c // S) % 128 == 0:
            return S, k2c // S
    return k2, C                          # small channel counts (e.g. the test)


# ---------------------------------------------------------------------------
# Routing kernel: one grid step per batch element.
#   sel1_ref / sel0_ref : SMEM scalar-prefetch, (B, n_ones) / (B, n_zeros) i32
#   x_ref               : (1, Nw, S, L) VMEM slab of window tiles
#   ones_ref / zeros_ref: (1, n_ones, S, L) / (1, n_zeros, S, L) outputs
# Each iteration copies one whole dense (S, L) tile; the dynamic window index
# lands on a leading axis so no (8,128) tile boundary is crossed.
# ---------------------------------------------------------------------------
def _make_route_kernel(n_ones, n_zeros, unroll=8):
    def route_kernel(sel1_ref, sel0_ref, x_ref, ones_ref, zeros_ref):
        b = pl.program_id(0)

        def copy_ones(m, carry):
            w = sel1_ref[b, m]
            ones_ref[0, m] = x_ref[0, w]          # whole (S, L) tile copy
            return carry

        def copy_zeros(m, carry):
            w = sel0_ref[b, m]
            zeros_ref[0, m] = x_ref[0, w]
            return carry

        if n_ones > 0:
            lax.fori_loop(0, n_ones, copy_ones, 0, unroll=min(unroll, n_ones))
        if n_zeros > 0:
            lax.fori_loop(0, n_zeros, copy_zeros, 0, unroll=min(unroll, n_zeros))

    return route_kernel


def route_windows(x_win, sel_ones, sel_zeros):
    """x_win: (B, Nw, S, L); sel_*: (B, n_*) int32 window indices."""
    B, Nw, S, L = x_win.shape
    n_ones = sel_ones.shape[1]
    n_zeros = sel_zeros.shape[1]
    itemsize = int(np.dtype(x_win.dtype).itemsize)
    tile_bytes = S * L * itemsize

    kernel = _make_route_kernel(n_ones, n_zeros)

    grid_spec = pltpu.PrefetchScalarGridSpec(
        num_scalar_prefetch=2,
        grid=(B,),
        in_specs=[pl.BlockSpec((1, Nw, S, L), lambda b, s1, s0: (b, 0, 0, 0))],
        out_specs=(
            pl.BlockSpec((1, n_ones, S, L), lambda b, s1, s0: (b, 0, 0, 0)),
            pl.BlockSpec((1, n_zeros, S, L), lambda b, s1, s0: (b, 0, 0, 0)),
        ),
    )

    # Explicit VMEM budget: double-buffered slab + both outputs.  Keeps medium
    # slabs working on v5e (16 MiB scoped default) and v7x (32 MiB of 64 MiB).
    vmem_need = 2 * (Nw + n_ones + n_zeros) * tile_bytes
    vmem_limit = int(min(max(vmem_need + (4 << 20), 32 << 20), 96 << 20))
    # TODO(synk): for slabs larger than ~1/4 of physical VMEM, switch x to
    # memory_space=pl.ANY and gather with double-buffered make_async_copy.

    bytes_accessed = int(B * (Nw + n_ones + n_zeros) * tile_bytes)

    return pl.pallas_call(
        kernel,
        out_shape=(jax.ShapeDtypeStruct((B, n_ones, S, L), x_win.dtype),
                   jax.ShapeDtypeStruct((B, n_zeros, S, L), x_win.dtype)),
        grid_spec=grid_spec,
        compiler_params=pltpu.CompilerParams(
            dimension_semantics=("parallel",),   # batch blocks are independent
            vmem_limit_bytes=vmem_limit,
        ),
        cost_estimate=pl.CostEstimate(flops=0, transcendentals=0,
                                      bytes_accessed=bytes_accessed),
    )(sel_ones, sel_zeros, x_win)


# ---------------------------------------------------------------------------
# Full WindowsMaskingRoute forward.
# Precondition (same implicit requirement as the PyTorch `.view(B, k**2, -1)`):
# every batch element must have exactly n_ones active and n_zeros inactive
# windows; otherwise the fixed-size nonzero compaction pads/drops windows.
# ---------------------------------------------------------------------------
@partial(jax.jit, static_argnums=(2, 3, 4))
def windows_masking_route(input_image, locality, window_size, n_ones, n_zeros):
    B, C, H, W = input_image.shape
    k = window_size
    Hk, Wk = H // k, W // k
    Nw = Hk * Wk
    k2 = k * k

    # deform_conv offset + apply_offset: exact identity on `locality`
    # (the offset gather source is all-zeros; the ==1 predicate never fires).
    offset_locality = locality                                    # (B, 1, H, W)

    # per-window "any" over each k x k patch
    win_any = jnp.any(
        offset_locality.reshape(B, Hk, k, Wk, k) != 0, axis=(2, 4)
    ).reshape(B, Nw)

    # compact kept / dropped window indices (static output sizes)
    sel_ones = jax.vmap(
        lambda wa: jnp.nonzero(wa, size=n_ones, fill_value=0)[0]
    )(win_any).astype(jnp.int32)
    sel_zeros = jax.vmap(
        lambda wa: jnp.nonzero(jnp.logical_not(wa), size=n_zeros, fill_value=0)[0]
    )(win_any).astype(jnp.int32)

    # window-major layout: one contiguous (kh, kw, c) run per window, viewed as
    # a dense (S, L) tile (L multiple of 128 whenever k*k*C allows it).
    # TODO(synk): this transpose plus the two output transposes below are the
    # remaining wrapper-side HBM copies; folding them into the kernel would
    # require in-kernel XLU transposes or strided DMA gathers from (B,C,H,W).
    S, L = _pick_window_tile(k2, C)
    x_win = (input_image
             .reshape(B, C, Hk, k, Wk, k)
             .transpose(0, 2, 4, 3, 5, 1)          # (B, Hk, Wk, kh, kw, C)
             .reshape(B, Nw, S, L))

    g1, g0 = route_windows(x_win, sel_ones, sel_zeros)   # (B, n_*, S, L)

    # match the PyTorch output layout (B, k*k, C*n): c-major / window-minor
    ones = (g1.reshape(B, n_ones, k2, C)
              .transpose(0, 2, 3, 1)
              .reshape(B, k2, C * n_ones))
    zeros = (g0.reshape(B, n_zeros, k2, C)
               .transpose(0, 2, 3, 1)
               .reshape(B, k2, C * n_zeros))
    return ones, zeros


# ---------------------------------------------------------------------------
# Pure numpy reference reproducing the PyTorch forward (for verification).
# ---------------------------------------------------------------------------
def torch_reference(x_np, loc_np, k):
    B, C, H, W = x_np.shape
    Nw = (H // k) * (W // k)
    mask = np.broadcast_to(loc_np, (B, C, H, W))      # offset_locality == locality

    def unfold(a):
        return (a.reshape(B, C, H // k, k, W // k, k)
                 .transpose(0, 1, 3, 5, 2, 4)
                 .reshape(B, C * k * k, Nw))

    def rearr(a):
        return (a.reshape(B, C, k, k, Nw)
                 .transpose(0, 2, 3, 1, 4)
                 .reshape(B, k * k, C * Nw))

    m_r = rearr(unfold(mask))
    x_r = rearr(unfold(x_np))
    image_mask = (m_r != 0).any(axis=1)               # (B, C*Nw)
    ones = np.stack([x_r[b][:, image_mask[b]] for b in range(B)])
    zeros = np.stack([x_r[b][:, ~image_mask[b]] for b in range(B)])
    return ones, zeros


if __name__ == "__main__":
    B, C, H, W = 2, 4, 16, 16
    k = 4
    Nw = (H // k) * (W // k)
    n_ones = Nw // 2
    n_zeros = Nw - n_ones

    key = jax.random.PRNGKey(0)
    kx, ks, kp = jax.random.split(key, 3)

    input_image = jax.random.normal(kx, (B, C, H, W), jnp.float32)

    # locality (B,1,H,W): exactly n_ones "active" windows per batch (so the
    # data-dependent .view() in the PyTorch code is well-defined), with
    # partially-filled windows to exercise the any-reduction.
    scores = jax.random.uniform(ks, (B, Nw))
    order = jnp.argsort(scores, axis=1)
    win_flag = jnp.zeros((B, Nw), bool).at[
        jnp.arange(B)[:, None], order[:, :n_ones]].set(True)
    loc_small = win_flag.reshape(B, H // k, W // k).astype(jnp.float32)
    full = jnp.repeat(jnp.repeat(loc_small, k, axis=1), k, axis=2)[:, None]
    bern = jax.random.bernoulli(kp, 0.5, (B, 1, H, W)).astype(jnp.float32)
    anchor = jnp.zeros((B, 1, H, W), jnp.float32).at[:, :, ::k, ::k].set(
        loc_small[:, None])
    locality = jnp.maximum(full * bern, anchor)

    ones, zeros = windows_masking_route(input_image, locality, k, n_ones, n_zeros)
    ones, zeros = jax.block_until_ready((ones, zeros))

    ones_ref, zeros_ref = torch_reference(np.asarray(input_image),
                                          np.asarray(locality), k)
    np.testing.assert_allclose(np.asarray(ones), ones_ref, rtol=1e-5, atol=1e-5)
    np.testing.assert_allclose(np.asarray(zeros), zeros_ref, rtol=1e-5, atol=1e-5)
    print("KERNEL_OK")
</pallas_src>

<mosaic_0001>
module attributes {stable_mosaic.version = 11 : i64} {
  func.func private @main(%arg0: i32) attributes {dimension_semantics = [#tpu.dimension_semantics<core_parallel>], iteration_bounds = array<i64: 2>, tpu.core_type = #tpu.core_type<sc_scalar_subcore>, window_params = []} {
    return
  }
}

module attributes {stable_mosaic.version = 11 : i64} {
  func.func private @main(%arg0: i32) attributes {dimension_semantics = [#tpu.dimension_semantics<core_parallel>], iteration_bounds = array<i64: 2>, tpu.core_type = #tpu.core_type<sc_scalar_subcore>, window_params = []} {
    return
  }
}

module attributes {stable_mosaic.version = 11 : i64} {
  func.func @route_kernel(%arg0: i32, %arg1: memref<2x8xi32, #tpu.memory_space<smem>>, %arg2: memref<2x8xi32, #tpu.memory_space<smem>>, %arg3: memref<1x16x16x4xf32, #tpu.memory_space<vmem>>, %arg4: memref<1x8x16x4xf32, #tpu.memory_space<vmem>>, %arg5: memref<1x8x16x4xf32, #tpu.memory_space<vmem>>) attributes {dimension_semantics = [#tpu.dimension_semantics<parallel>], iteration_bounds = array<i64: 2>, scalar_prefetch = 2 : i64, scratch_operands = 0 : i64, tpu.core_type = #tpu.core_type<tc>, window_params = [{transform_indices = @transform_0, window_bounds = array<i64: 1, 16, 16, 4>}, {transform_indices = @transform_1, window_bounds = array<i64: 1, 8, 16, 4>}, {transform_indices = @transform_2, window_bounds = array<i64: 1, 8, 16, 4>}]} {
    %c0_i32 = arith.constant 0 : i32
    %0 = arith.index_cast %arg0 : i32 to index
    %1 = arith.index_cast %c0_i32 : i32 to index
    %2 = memref.load %arg1[%0, %1] : memref<2x8xi32, #tpu.memory_space<smem>>
    %c0 = arith.constant 0 : index
    %3 = arith.index_cast %2 : i32 to index
    %c0_0 = arith.constant 0 : index
    %c0_1 = arith.constant 0 : index
    %4 = vector.load %arg3[%c0, %3, %c0_0, %c0_1] : memref<1x16x16x4xf32, #tpu.memory_space<vmem>>, vector<1x1x16x4xf32>
    %5 = vector.shape_cast %4 : vector<1x1x16x4xf32> to vector<16x4xf32>
    %c0_2 = arith.constant 0 : index
    %6 = arith.index_cast %c0_i32 : i32 to index
    %c0_3 = arith.constant 0 : index
    %c0_4 = arith.constant 0 : index
    %7 = vector.load %arg4[%c0_2, %6, %c0_3, %c0_4] : memref<1x8x16x4xf32, #tpu.memory_space<vmem>>, vector<1x1x16x4xf32>
    %8 = vector.shape_cast %7 : vector<1x1x16x4xf32> to vector<16x4xf32>
    %9 = vector.shape_cast %5 : vector<16x4xf32> to vector<1x1x16x4xf32>
    tpu.vector_store %arg4[%c0_2, %6, %c0_3, %c0_4], %9 {strides = array<i32>} : memref<1x8x16x4xf32, #tpu.memory_space<vmem>>, vector<1x1x16x4xf32>,
    %c1_i32 = arith.constant 1 : i32
    %10 = arith.index_cast %arg0 : i32 to index
    %11 = arith.index_cast %c1_i32 : i32 to index
    %12 = memref.load %arg1[%10, %11] : memref<2x8xi32, #tpu.memory_space<smem>>
    %c0_5 = arith.constant 0 : index
    %13 = arith.index_cast %12 : i32 to index
    %c0_6 = arith.constant 0 : index
    %c0_7 = arith.constant 0 : index
    %14 = vector.load %arg3[%c0_5, %13, %c0_6, %c0_7] : memref<1x16x16x4xf32, #tpu.memory_space<vmem>>, vector<1x1x16x4xf32>
    %15 = vector.shape_cast %14 : vector<1x1x16x4xf32> to vector<16x4xf32>
    %c0_8 = arith.constant 0 : index
    %16 = arith.index_cast %c1_i32 : i32 to index
    %c0_9 = arith.constant 0 : index
    %c0_10 = arith.constant 0 : index
    %17 = vector.load %arg4[%c0_8, %16, %c0_9, %c0_10] : memref<1x8x16x4xf32, #tpu.memory_space<vmem>>, vector<1x1x16x4xf32>
    %18 = vector.shape_cast %17 : vector<1x1x16x4xf32> to vector<16x4xf32>
    %19 = vector.shape_cast %15 : vector<16x4xf32> to vector<1x1x16x4xf32>
    tpu.vector_store %arg4[%c0_8, %16, %c0_9, %c0_10], %19 {strides = array<i32>} : memref<1x8x16x4xf32, #tpu.memory_space<vmem>>, vector<1x1x16x4xf32>,
    %c2_i32 = arith.constant 2 : i32
    %20 = arith.index_cast %arg0 : i32 to index
    %21 = arith.index_cast %c2_i32 : i32 to index
    %22 = memref.load %arg1[%20, %21] : memref<2x8xi32, #tpu.memory_space<smem>>
    %c0_11 = arith.constant 0 : index
    %23 = arith.index_cast %22 : i32 to index
    %c0_12 = arith.constant 0 : index
    %c0_13 = arith.constant 0 : index
    %24 = vector.load %arg3[%c0_11, %23, %c0_12, %c0_13] : memref<1x16x16x4xf32, #tpu.memory_space<vmem>>, vector<1x1x16x4xf32>
    %25 = vector.shape_cast %24 : vector<1x1x16x4xf32> to vector<16x4xf32>
    %c0_14 = arith.constant 0 : index
    %26 = arith.index_cast %c2_i32 : i32 to index
    %c0_15 = arith.constant 0 : index
    %c0_16 = arith.constant 0 : index
    %27 = vector.load %arg4[%c0_14, %26, %c0_15, %c0_16] : memref<1x8x16x4xf32, #tpu.memory_space<vmem>>, vector<1x1x16x4xf32>
    %28 = vector.shape_cast %27 : vector<1x1x16x4xf32> to vector<16x4xf32>
    %29 = vector.shape_cast %25 : vector<16x4xf32> to vector<1x1x16x4xf32>
    tpu.vector_store %arg4[%c0_14, %26, %c0_15, %c0_16], %29 {strides = array<i32>} : memref<1x8x16x4xf32, #tpu.memory_space<vmem>>, vector<1x1x16x4xf32>,
    %c3_i32 = arith.constant 3 : i32
    %30 = arith.index_cast %arg0 : i32 to index
    %31 = arith.index_cast %c3_i32 : i32 to index
    %32 = memref.load %arg1[%30, %31] : memref<2x8xi32, #tpu.memory_space<smem>>
    %c0_17 = arith.constant 0 : index
    %33 = arith.index_cast %32 : i32 to index
    %c0_18 = arith.constant 0 : index
    %c0_19 = arith.constant 0 : index
    %34 = vector.load %arg3[%c0_17, %33, %c0_18, %c0_19] : memref<1x16x16x4xf32, #tpu.memory_space<vmem>>, vector<1x1x16x4xf32>
    %35 = vector.shape_cast %34 : vector<1x1x16x4xf32> to vector<16x4xf32>
    %c0_20 = arith.constant 0 : index
    %36 = arith.index_cast %c3_i32 : i32 to index
    %c0_21 = arith.constant 0 : index
    %c0_22 = arith.constant 0 : index
    %37 = vector.load %arg4[%c0_20, %36, %c0_21, %c0_22] : memref<1x8x16x4xf32, #tpu.memory_space<vmem>>, vector<1x1x16x4xf32>
    %38 = vector.shape_cast %37 : vector<1x1x16x4xf32> to vector<16x4xf32>
    %39 = vector.shape_cast %35 : vector<16x4xf32> to vector<1x1x16x4xf32>
    tpu.vector_store %arg4[%c0_20, %36, %c0_21, %c0_22], %39 {strides = array<i32>} : memref<1x8x16x4xf32, #tpu.memory_space<vmem>>, vector<1x1x16x4xf32>,
    %c4_i32 = arith.constant 4 : i32
    %40 = arith.index_cast %arg0 : i32 to index
    %41 = arith.index_cast %c4_i32 : i32 to index
    %42 = memref.load %arg1[%40, %41] : memref<2x8xi32, #tpu.memory_space<smem>>
    %c0_23 = arith.constant 0 : index
    %43 = arith.index_cast %42 : i32 to index
    %c0_24 = arith.constant 0 : index
    %c0_25 = arith.constant 0 : index
    %44 = vector.load %arg3[%c0_23, %43, %c0_24, %c0_25] : memref<1x16x16x4xf32, #tpu.memory_space<vmem>>, vector<1x1x16x4xf32>
    %45 = vector.shape_cast %44 : vector<1x1x16x4xf32> to vector<16x4xf32>
    %c0_26 = arith.constant 0 : index
    %46 = arith.index_cast %c4_i32 : i32 to index
    %c0_27 = arith.constant 0 : index
    %c0_28 = arith.constant 0 : index
    %47 = vector.load %arg4[%c0_26, %46, %c0_27, %c0_28] : memref<1x8x16x4xf32, #tpu.memory_space<vmem>>, vector<1x1x16x4xf32>
    %48 = vector.shape_cast %47 : vector<1x1x16x4xf32> to vector<16x4xf32>
    %49 = vector.shape_cast %45 : vector<16x4xf32> to vector<1x1x16x4xf32>
    tpu.vector_store %arg4[%c0_26, %46, %c0_27, %c0_28], %49 {strides = array<i32>} : memref<1x8x16x4xf32, #tpu.memory_space<vmem>>, vector<1x1x16x4xf32>,
    %c5_i32 = arith.constant 5 : i32
    %50 = arith.index_cast %arg0 : i32 to index
    %51 = arith.index_cast %c5_i32 : i32 to index
    %52 = memref.load %arg1[%50, %51] : memref<2x8xi32, #tpu.memory_space<smem>>
    %c0_29 = arith.constant 0 : index
    %53 = arith.index_cast %52 : i32 to index
    %c0_30 = arith.constant 0 : index
    %c0_31 = arith.constant 0 : index
    %54 = vector.load %arg3[%c0_29, %53, %c0_30, %c0_31] : memref<1x16x16x4xf32, #tpu.memory_space<vmem>>, vector<1x1x16x4xf32>
    %55 = vector.shape_cast %54 : vector<1x1x16x4xf32> to vector<16x4xf32>
    %c0_32 = arith.constant 0 : index
    %56 = arith.index_cast %c5_i32 : i32 to index
    %c0_33 = arith.constant 0 : index
    %c0_34 = arith.constant 0 : index
    %57 = vector.load %arg4[%c0_32, %56, %c0_33, %c0_34] : memref<1x8x16x4xf32, #tpu.memory_space<vmem>>, vector<1x1x16x4xf32>
    %58 = vector.shape_cast %57 : vector<1x1x16x4xf32> to vector<16x4xf32>
    %59 = vector.shape_cast %55 : vector<16x4xf32> to vector<1x1x16x4xf32>
    tpu.vector_store %arg4[%c0_32, %56, %c0_33, %c0_34], %59 {strides = array<i32>} : memref<1x8x16x4xf32, #tpu.memory_space<vmem>>, vector<1x1x16x4xf32>,
    %c6_i32 = arith.constant 6 : i32
    %60 = arith.index_cast %arg0 : i32 to index
    %61 = arith.index_cast %c6_i32 : i32 to index
    %62 = memref.load %arg1[%60, %61] : memref<2x8xi32, #tpu.memory_space<smem>>
    %c0_35 = arith.constant 0 : index
    %63 = arith.index_cast %62 : i32 to index
    %c0_36 = arith.constant 0 : index
    %c0_37 = arith.constant 0 : index
    %64 = vector.load %arg3[%c0_35, %63, %c0_36, %c0_37] : memref<1x16x16x4xf32, #tpu.memory_space<vmem>>, vector<1x1x16x4xf32>
    %65 = vector.shape_cast %64 : vector<1x1x16x4xf32> to vector<16x4xf32>
    %c0_38 = arith.constant 0 : index
    %66 = arith.index_cast %c6_i32 : i32 to index
    %c0_39 = arith.constant 0 : index
    %c0_40 = arith.constant 0 : index
    %67 = vector.load %arg4[%c0_38, %66, %c0_39, %c0_40] : memref<1x8x16x4xf32, #tpu.memory_space<vmem>>, vector<1x1x16x4xf32>
    %68 = vector.shape_cast %67 : vector<1x1x16x4xf32> to vector<16x4xf32>
    %69 = vector.shape_cast %65 : vector<16x4xf32> to vector<1x1x16x4xf32>
    tpu.vector_store %arg4[%c0_38, %66, %c0_39, %c0_40], %69 {strides = array<i32>} : memref<1x8x16x4xf32, #tpu.memory_space<vmem>>, vector<1x1x16x4xf32>,
    %c7_i32 = arith.constant 7 : i32
    %70 = arith.index_cast %arg0 : i32 to index
    %71 = arith.index_cast %c7_i32 : i32 to index
    %72 = memref.load %arg1[%70, %71] : memref<2x8xi32, #tpu.memory_space<smem>>
    %c0_41 = arith.constant 0 : index
    %73 = arith.index_cast %72 : i32 to index
    %c0_42 = arith.constant 0 : index
    %c0_43 = arith.constant 0 : index
    %74 = vector.load %arg3[%c0_41, %73, %c0_42, %c0_43] : memref<1x16x16x4xf32, #tpu.memory_space<vmem>>, vector<1x1x16x4xf32>
    %75 = vector.shape_cast %74 : vector<1x1x16x4xf32> to vector<16x4xf32>
    %c0_44 = arith.constant 0 : index
    %76 = arith.index_cast %c7_i32 : i32 to index
    %c0_45 = arith.constant 0 : index
    %c0_46 = arith.constant 0 : index
    %77 = vector.load %arg4[%c0_44, %76, %c0_45, %c0_46] : memref<1x8x16x4xf32, #tpu.memory_space<vmem>>, vector<1x1x16x4xf32>
    %78 = vector.shape_cast %77 : vector<1x1x16x4xf32> to vector<16x4xf32>
    %79 = vector.shape_cast %75 : vector<16x4xf32> to vector<1x1x16x4xf32>
    tpu.vector_store %arg4[%c0_44, %76, %c0_45, %c0_46], %79 {strides = array<i32>} : memref<1x8x16x4xf32, #tpu.memory_space<vmem>>, vector<1x1x16x4xf32>,
    %c8_i32 = arith.constant 8 : i32
    %c0_i32_47 = arith.constant 0 : i32
    %80 = arith.index_cast %arg0 : i32 to index
    %81 = arith.index_cast %c0_i32_47 : i32 to index
    %82 = memref.load %arg2[%80, %81] : memref<2x8xi32, #tpu.memory_space<smem>>
    %c0_48 = arith.constant 0 : index
    %83 = arith.index_cast %82 : i32 to index
    %c0_49 = arith.constant 0 : index
    %c0_50 = arith.constant 0 : index
    %84 = vector.load %arg3[%c0_48, %83, %c0_49, %c0_50] : memref<1x16x16x4xf32, #tpu.memory_space<vmem>>, vector<1x1x16x4xf32>
    %85 = vector.shape_cast %84 : vector<1x1x16x4xf32> to vector<16x4xf32>
    %c0_51 = arith.constant 0 : index
    %86 = arith.index_cast %c0_i32_47 : i32 to index
    %c0_52 = arith.constant 0 : index
    %c0_53 = arith.constant 0 : index
    %87 = vector.load %arg5[%c0_51, %86, %c0_52, %c0_53] : memref<1x8x16x4xf32, #tpu.memory_space<vmem>>, vector<1x1x16x4xf32>
    %88 = vector.shape_cast %87 : vector<1x1x16x4xf32> to vector<16x4xf32>
    %89 = vector.shape_cast %85 : vector<16x4xf32> to vector<1x1x16x4xf32>
    tpu.vector_store %arg5[%c0_51, %86, %c0_52, %c0_53], %89 {strides = array<i32>} : memref<1x8x16x4xf32, #tpu.memory_space<vmem>>, vector<1x1x16x4xf32>,
    %c1_i32_54 = arith.constant 1 : i32
    %90 = arith.index_cast %arg0 : i32 to index
    %91 = arith.index_cast %c1_i32_54 : i32 to index
    %92 = memref.load %arg2[%90, %91] : memref<2x8xi32, #tpu.memory_space<smem>>
    %c0_55 = arith.constant 0 : index
    %93 = arith.index_cast %92 : i32 to index
    %c0_56 = arith.constant 0 : index
    %c0_57 = arith.constant 0 : index
    %94 = vector.load %arg3[%c0_55, %93, %c0_56, %c0_57] : memref<1x16x16x4xf32, #tpu.memory_space<vmem>>, vector<1x1x16x4xf32>
    %95 = vector.shape_cast %94 : vector<1x1x16x4xf32> to vector<16x4xf32>
    %c0_58 = arith.constant 0 : index
    %96 = arith.index_cast %c1_i32_54 : i32 to index
    %c0_59 = arith.constant 0 : index
    %c0_60 = arith.constant 0 : index
    %97 = vector.load %arg5[%c0_58, %96, %c0_59, %c0_60] : memref<1x8x16x4xf32, #tpu.memory_space<vmem>>, vector<1x1x16x4xf32>
    %98 = vector.shape_cast %97 : vector<1x1x16x4xf32> to vector<16x4xf32>
    %99 = vector.shape_cast %95 : vector<16x4xf32> to vector<1x1x16x4xf32>
    tpu.vector_store %arg5[%c0_58, %96, %c0_59, %c0_60], %99 {strides = array<i32>} : memref<1x8x16x4xf32, #tpu.memory_space<vmem>>, vector<1x1x16x4xf32>,
    %c2_i32_61 = arith.constant 2 : i32
    %100 = arith.index_cast %arg0 : i32 to index
    %101 = arith.index_cast %c2_i32_61 : i32 to index
    %102 = memref.load %arg2[%100, %101] : memref<2x8xi32, #tpu.memory_space<smem>>
    %c0_62 = arith.constant 0 : index
    %103 = arith.index_cast %102 : i32 to index
    %c0_63 = arith.constant 0 : index
    %c0_64 = arith.constant 0 : index
    %104 = vector.load %arg3[%c0_62, %103, %c0_63, %c0_64] : memref<1x16x16x4xf32, #tpu.memory_space<vmem>>, vector<1x1x16x4xf32>
    %105 = vector.shape_cast %104 : vector<1x1x16x4xf32> to vector<16x4xf32>
    %c0_65 = arith.constant 0 : index
    %106 = arith.index_cast %c2_i32_61 : i32 to index
    %c0_66 = arith.constant 0 : index
    %c0_67 = arith.constant 0 : index
    %107 = vector.load %arg5[%c0_65, %106, %c0_66, %c0_67] : memref<1x8x16x4xf32, #tpu.memory_space<vmem>>, vector<1x1x16x4xf32>
    %108 = vector.shape_cast %107 : vector<1x1x16x4xf32> to vector<16x4xf32>
    %109 = vector.shape_cast %105 : vector<16x4xf32> to vector<1x1x16x4xf32>
    tpu.vector_store %arg5[%c0_65, %106, %c0_66, %c0_67], %109 {strides = array<i32>} : memref<1x8x16x4xf32, #tpu.memory_space<vmem>>, vector<1x1x16x4xf32>,
    %c3_i32_68 = arith.constant 3 : i32
    %110 = arith.index_cast %arg0 : i32 to index
    %111 = arith.index_cast %c3_i32_68 : i32 to index
    %112 = memref.load %arg2[%110, %111] : memref<2x8xi32, #tpu.memory_space<smem>>
    %c0_69 = arith.constant 0 : index
    %113 = arith.index_cast %112 : i32 to index
    %c0_70 = arith.constant 0 : index
    %c0_71 = arith.constant 0 : index
    %114 = vector.load %arg3[%c0_69, %113, %c0_70, %c0_71] : memref<1x16x16x4xf32, #tpu.memory_space<vmem>>, vector<1x1x16x4xf32>
    %115 = vector.shape_cast %114 : vector<1x1x16x4xf32> to vector<16x4xf32>
    %c0_72 = arith.constant 0 : index
    %116 = arith.index_cast %c3_i32_68 : i32 to index
    %c0_73 = arith.constant 0 : index
    %c0_74 = arith.constant 0 : index
    %117 = vector.load %arg5[%c0_72, %116, %c0_73, %c0_74] : memref<1x8x16x4xf32, #tpu.memory_space<vmem>>, vector<1x1x16x4xf32>
    %118 = vector.shape_cast %117 : vector<1x1x16x4xf32> to vector<16x4xf32>
    %119 = vector.shape_cast %115 : vector<16x4xf32> to vector<1x1x16x4xf32>
    tpu.vector_store %arg5[%c0_72, %116, %c0_73, %c0_74], %119 {strides = array<i32>} : memref<1x8x16x4xf32, #tpu.memory_space<vmem>>, vector<1x1x16x4xf32>,
    %c4_i32_75 = arith.constant 4 : i32
    %120 = arith.index_cast %arg0 : i32 to index
    %121 = arith.index_cast %c4_i32_75 : i32 to index
    %122 = memref.load %arg2[%120, %121] : memref<2x8xi32, #tpu.memory_space<smem>>
    %c0_76 = arith.constant 0 : index
    %123 = arith.index_cast %122 : i32 to index
    %c0_77 = arith.constant 0 : index
    %c0_78 = arith.constant 0 : index
    %124 = vector.load %arg3[%c0_76, %123, %c0_77, %c0_78] : memref<1x16x16x4xf32, #tpu.memory_space<vmem>>, vector<1x1x16x4xf32>
    %125 = vector.shape_cast %124 : vector<1x1x16x4xf32> to vector<16x4xf32>
    %c0_79 = arith.constant 0 : index
    %126 = arith.index_cast %c4_i32_75 : i32 to index
    %c0_80 = arith.constant 0 : index
    %c0_81 = arith.constant 0 : index
    %127 = vector.load %arg5[%c0_79, %126, %c0_80, %c0_81] : memref<1x8x16x4xf32, #tpu.memory_space<vmem>>, vector<1x1x16x4xf32>
    %128 = vector.shape_cast %127 : vector<1x1x16x4xf32> to vector<16x4xf32>
    %129 = vector.shape_cast %125 : vector<16x4xf32> to vector<1x1x16x4xf32>
    tpu.vector_store %arg5[%c0_79, %126, %c0_80, %c0_81], %129 {strides = array<i32>} : memref<1x8x16x4xf32, #tpu.memory_space<vmem>>, vector<1x1x16x4xf32>,
    %c5_i32_82 = arith.constant 5 : i32
    %130 = arith.index_cast %arg0 : i32 to index
    %131 = arith.index_cast %c5_i32_82 : i32 to index
    %132 = memref.load %arg2[%130, %131] : memref<2x8xi32, #tpu.memory_space<smem>>
    %c0_83 = arith.constant 0 : index
    %133 = arith.index_cast %132 : i32 to index
    %c0_84 = arith.constant 0 : index
    %c0_85 = arith.constant 0 : index
    %134 = vector.load %arg3[%c0_83, %133, %c0_84, %c0_85] : memref<1x16x16x4xf32, #tpu.memory_space<vmem>>, vector<1x1x16x4xf32>
    %135 = vector.shape_cast %134 : vector<1x1x16x4xf32> to vector<16x4xf32>
    %c0_86 = arith.constant 0 : index
    %136 = arith.index_cast %c5_i32_82 : i32 to index
    %c0_87 = arith.constant 0 : index
    %c0_88 = arith.constant 0 : index
    %137 = vector.load %arg5[%c0_86, %136, %c0_87, %c0_88] : memref<1x8x16x4xf32, #tpu.memory_space<vmem>>, vector<1x1x16x4xf32>
    %138 = vector.shape_cast %137 : vector<1x1x16x4xf32> to vector<16x4xf32>
    %139 = vector.shape_cast %135 : vector<16x4xf32> to vector<1x1x16x4xf32>
    tpu.vector_store %arg5[%c0_86, %136, %c0_87, %c0_88], %139 {strides = array<i32>} : memref<1x8x16x4xf32, #tpu.memory_space<vmem>>, vector<1x1x16x4xf32>,
    %c6_i32_89 = arith.constant 6 : i32
    %140 = arith.index_cast %arg0 : i32 to index
    %141 = arith.index_cast %c6_i32_89 : i32 to index
    %142 = memref.load %arg2[%140, %141] : memref<2x8xi32, #tpu.memory_space<smem>>
    %c0_90 = arith.constant 0 : index
    %143 = arith.index_cast %142 : i32 to index
    %c0_91 = arith.constant 0 : index
    %c0_92 = arith.constant 0 : index
    %144 = vector.load %arg3[%c0_90, %143, %c0_91, %c0_92] : memref<1x16x16x4xf32, #tpu.memory_space<vmem>>, vector<1x1x16x4xf32>
    %145 = vector.shape_cast %144 : vector<1x1x16x4xf32> to vector<16x4xf32>
    %c0_93 = arith.constant 0 : index
    %146 = arith.index_cast %c6_i32_89 : i32 to index
    %c0_94 = arith.constant 0 : index
    %c0_95 = arith.constant 0 : index
    %147 = vector.load %arg5[%c0_93, %146, %c0_94, %c0_95] : memref<1x8x16x4xf32, #tpu.memory_space<vmem>>, vector<1x1x16x4xf32>
    %148 = vector.shape_cast %147 : vector<1x1x16x4xf32> to vector<16x4xf32>
    %149 = vector.shape_cast %145 : vector<16x4xf32> to vector<1x1x16x4xf32>
    tpu.vector_store %arg5[%c0_93, %146, %c0_94, %c0_95], %149 {strides = array<i32>} : memref<1x8x16x4xf32, #tpu.memory_space<vmem>>, vector<1x1x16x4xf32>,
    %c7_i32_96 = arith.constant 7 : i32
    %150 = arith.index_cast %arg0 : i32 to index
    %151 = arith.index_cast %c7_i32_96 : i32 to index
    %152 = memref.load %arg2[%150, %151] : memref<2x8xi32, #tpu.memory_space<smem>>
    %c0_97 = arith.constant 0 : index
    %153 = arith.index_cast %152 : i32 to index
    %c0_98 = arith.constant 0 : index
    %c0_99 = arith.constant 0 : index
    %154 = vector.load %arg3[%c0_97, %153, %c0_98, %c0_99] : memref<1x16x16x4xf32, #tpu.memory_space<vmem>>, vector<1x1x16x4xf32>
    %155 = vector.shape_cast %154 : vector<1x1x16x4xf32> to vector<16x4xf32>
    %c0_100 = arith.constant 0 : index
    %156 = arith.index_cast %c7_i32_96 : i32 to index
    %c0_101 = arith.constant 0 : index
    %c0_102 = arith.constant 0 : index
    %157 = vector.load %arg5[%c0_100, %156, %c0_101, %c0_102] : memref<1x8x16x4xf32, #tpu.memory_space<vmem>>, vector<1x1x16x4xf32>
    %158 = vector.shape_cast %157 : vector<1x1x16x4xf32> to vector<16x4xf32>
    %159 = vector.shape_cast %155 : vector<16x4xf32> to vector<1x1x16x4xf32>
    tpu.vector_store %arg5[%c0_100, %156, %c0_101, %c0_102], %159 {strides = array<i32>} : memref<1x8x16x4xf32, #tpu.memory_space<vmem>>, vector<1x1x16x4xf32>,
    %c8_i32_103 = arith.constant 8 : i32
    return
  }
  func.func @transform_0(%arg0: i32, %arg1: memref<2x8xi32, #tpu.memory_space<smem>>, %arg2: memref<2x8xi32, #tpu.memory_space<smem>>) -> (i32, i32, i32, i32) {
    %c0_i32 = arith.constant 0 : i32
    %c0_i32_0 = arith.constant 0 : i32
    %c0_i32_1 = arith.constant 0 : i32
    %c0_i32_2 = arith.constant 0 : i32
    return %arg0, %c0_i32, %c0_i32_0, %c0_i32_1 : i32, i32, i32, i32
  }
  func.func @transform_1(%arg0: i32, %arg1: memref<2x8xi32, #tpu.memory_space<smem>>, %arg2: memref<2x8xi32, #tpu.memory_space<smem>>) -> (i32, i32, i32, i32) {
    %c0_i32 = arith.constant 0 : i32
    %c0_i32_0 = arith.constant 0 : i32
    %c0_i32_1 = arith.constant 0 : i32
    %c0_i32_2 = arith.constant 0 : i32
    return %arg0, %c0_i32, %c0_i32_0, %c0_i32_1 : i32, i32, i32, i32
  }
  func.func @transform_2(%arg0: i32, %arg1: memref<2x8xi32, #tpu.memory_space<smem>>, %arg2: memref<2x8xi32, #tpu.memory_space<smem>>) -> (i32, i32, i32, i32) {
    %c0_i32 = arith.constant 0 : i32
    %c0_i32_0 = arith.constant 0 : i32
    %c0_i32_1 = arith.constant 0 : i32
    %c0_i32_2 = arith.constant 0 : i32
    return %arg0, %c0_i32, %c0_i32_0, %c0_i32_1 : i32, i32, i32, i32
  }
}

</mosaic_0001>

<bundles_post_ra>
// kernel: windows_masking_route.1
= control target key start
LH: loop header
LB: loop body
LE: loop exit
PB: predicated region body
PF: predicated region fallthrough
CT: control target
= control target key end

     0   :  { %s733_s0 = inlined_call_operand.vmem [shape: s32[2,8], index: 0, kind: input, shape index: {}]   ;;  %s734_s2 = inlined_call_operand.vmem [shape: f32[2,16,16,4], index: 2, kind: input, shape index: {}]   ;;  %s735_s3 = inlined_call_operand.vmem [shape: f32[2,8,16,4], index: 3, kind: output, shape index: {0}]   ;;  %s736_s4 = inlined_call_operand.vmem [shape: f32[2,8,16,4], index: 4, kind: output, shape index: {1}]   ;;  %s737_s1 = inlined_call_operand.vmem [shape: s32[2,8], index: 1, kind: input, shape index: {}]  }
   0x1   :  { %s10_s17 = sshll.u32 %s733_s0, 4  ;;  %s14_s20 = sshll.u32 %s737_s1, 4  ;;  %s11_s17 = int_to_ptr.vmem [resolvable:$true] %s10_s17  ;;  %s15_s20 = int_to_ptr.vmem [resolvable:$true] %s14_s20 }
   0x2   :  { %s495_s21 = scalar_lea.vmem %s11_s17, 32  ;;  %p500_p1 = scmp.lt.s32.totalorder %s11_s17, %s11_s17 }
   0x3   :  { %p496_p0 = scmp.ne.s32.totalorder %s11_s17, %s495_s21  ;;  %p501_p2 = scmp.lt.s32.totalorder %s495_s21, %s495_s21 }
   0x5   :  { %p502_p3 = por %p501_p2, %p500_p1 }
   0x7   :  { %p503_p4 = pnand %p502_p3, %p496_p0 }
   0x9   :  { %506 = shalt.err (!%p503_p4)  }
   0xa   :  { %s529_s22 = smov [#allocation3]   ;;  %s507_s23 = scalar_lea.vmem %s15_s20, 32 }
   0xb   :  { %13 = dma.vmem_to_smem %s11_s17, 32, %s529_s22, [#allocation2] }
   0xc   :  { %p508_p5 = scmp.ne.s32.totalorder %s15_s20, %s507_s23  ;;  %p512_p6 = scmp.lt.s32.totalorder %s15_s20, %s15_s20 }
   0xd   :  { %p513_p7 = scmp.lt.s32.totalorder %s507_s23, %s507_s23 }
   0xf   :  { %p514_p8 = por %p513_p7, %p512_p6 }
  0x11   :  { %p515_p9 = pnand %p514_p8, %p508_p5 }
  0x13   :  { %518 = shalt.err (!%p515_p9)  }
  0x14   :  { %s530_s0 = smov [#allocation4]  }
  0x15   :  { %17 = dma.vmem_to_smem %s15_s20, 32, %s530_s0, [#allocation2] }
  0x16   :  { %523 = dma.done.wait [#allocation2], 64 }
  0x17   :  { %524 = vsyncadd [#allocation2], 4294967232 }
  0x18   :  { %19 = sfence }
  0x19   :  { %s562_s1 = smov 0  }
  0x1a LB: > { %s424_s24 = sadd.s32 4294967295, %s527_s1   ;;  %p428_p10 = scmp.ge.s32.totalorder %s527_s1, 1  ;;  %s527_s1 = sphi %s562_s1, %s25_s1  }
  0x1b   : > { %p127_p11 = scmp.lt.s32.totalorder %s527_s1, 3 }
  0x1d   : > { %p128_p12 = pnand %p428_p10, %p127_p11 }
  0x1e   : > { %p154_p13 = scmp.lt.s32.totalorder (!%p128_p12), %s424_s24, 1  ;;  %s570_s25 = sshll.u32 (!%p128_p12), %s424_s24, 7  ;;  %vm175_vm0 = vcmask (!%p128_p12), 31744  }
  0x1f   : > { %131 = sbr.rel (%p128_p12) target bundleno = 65 (0x41), region = 24  ;;  %s170_s26 = sld [smem:[#allocation3 + %s570_s25]] (!%p128_p12) }
  0x20   : > { %s178_s27 = sadd.s32 (!%p128_p12), 1, %s570_s25  ;;  %s187_s29 = sadd.s32 (!%p128_p12), 2, %s570_s25 }
  0x21   : > { %s179_s28 = sld [smem:[#allocation3 + %s178_s27]] (!%p128_p12)  ;;  %s196_s13 = sadd.s32 (!%p128_p12), 3, %s570_s25 }
  0x22   : > { %s188_s12 = sld [smem:[#allocation3 + %s187_s29]] (!%p128_p12)  ;;  %s205_s17 = sadd.s32 (!%p128_p12), 4, %s570_s25 }
  0x23   : > { %s197_s15 = sld [smem:[#allocation3 + %s196_s13]] (!%p128_p12)  ;;  %s214_s21 = sadd.s32 (!%p128_p12), 5, %s570_s25 }
  0x24   : > { %s206_s19 = sld [smem:[#allocation3 + %s205_s17]] (!%p128_p12)  ;;  %s223_s23 = sadd.s32 (!%p128_p12), 6, %s570_s25 }
  0x25   : > { %s436_s14 = sshll.u32 (!%p128_p12), %s170_s26, 4  ;;  %s610_s22 = sld [smem:[#allocation3 + %s214_s21]] (!%p128_p12) }
  0x26   : > { %s739_s24 = smov (!%p154_p13, %s424_s24), 1  ;;  %s224_s26 = sld [smem:[#allocation3 + %s223_s23]] }
  0x27   : > { %s482_s30 = sshll.u32 %s739_s24, 8  ;;  %s483_s5 = sshll.u32 %s739_s24, 7 }
  0x28   : > { %s584_s8 = scalar_lea.vmem %s734_s2, %s482_s30  ;;  %s591_s11 = scalar_lea.vmem %s735_s3, %s483_s5 }
  0x29   : > { %s172_s16 = scalar_lea.vmem %s584_s8, %s436_s14  ;;  %s437_s18 = sshll.u32 %s179_s28, 4 }
  0x2a   : > { %v173_v0 = vld [vmem:[%s172_s16] sm:$0xff]  ;;  %v174_v1 = vld [vmem:[%s172_s16 + $0x8] sm:$0xff]  ;;  %s181_s20 = scalar_lea.vmem %s584_s8, %s437_s18  ;;  %s440_s0 = sshll.u32 %s188_s12, 4 }
  0x2b   : > { %176 = vst.msk [vmem:[%s591_s11] sm:$0xff] %vm175_vm0, %v173_v0  ;;  %177 = vst.msk [vmem:[%s591_s11 + $0x8] sm:$0xff] %vm175_vm0, %v174_v1  ;;  %v182_v2 = vld [vmem:[%s181_s20] sm:$0xff]  ;;  %v183_v3 = vld [vmem:[%s181_s20 + $0x8] sm:$0xff]  ;;  %s190_s28 = scalar_lea.vmem %s584_s8, %s440_s0  ;;  %s443_s30 = sshll.u32 %s197_s15, 4 }
  0x2c   : > { %438 = vst.msk [vmem:[%s591_s11 + $0x10] sm:$0xff] %vm175_vm0, %v182_v2  ;;  %439 = vst.msk [vmem:[%s591_s11 + $0x18] sm:$0xff] %vm175_vm0, %v183_v3  ;;  %v191_v4 = vld [vmem:[%s190_s28] sm:$0xff]  ;;  %v192_v5 = vld [vmem:[%s190_s28 + $0x8] sm:$0xff]  ;;  %s199_s6 = scalar_lea.vmem %s584_s8, %s443_s30  ;;  %s232_s7 = sadd.s32 7, %s570_s25 }
  0x2d   : > { %441 = vst.msk [vmem:[%s591_s11 + $0x20] sm:$0xff] %vm175_vm0, %v191_v4  ;;  %442 = vst.msk [vmem:[%s591_s11 + $0x28] sm:$0xff] %vm175_vm0, %v192_v5  ;;  %v200_v6 = vld [vmem:[%s199_s6] sm:$0xff]  ;;  %v201_v7 = vld [vmem:[%s199_s6 + $0x8] sm:$0xff]  ;;  %s446_s9 = sshll.u32 %s206_s19, 4  ;;  %s233_s10 = sld [smem:[#allocation3 + %s232_s7]] }
  0x2e   : > { %444 = vst.msk [vmem:[%s591_s11 + $0x30] sm:$0xff] %vm175_vm0, %v200_v6  ;;  %445 = vst.msk [vmem:[%s591_s11 + $0x38] sm:$0xff] %vm175_vm0, %v201_v7  ;;  %s208_s12 = scalar_lea.vmem %s584_s8, %s446_s9  ;;  %s638_s16 = scalar_lea.vmem %s736_s4, %s483_s5 }
  0x2f   : > { %v209_v8 = vld [vmem:[%s208_s12] sm:$0xff]  ;;  %v210_v9 = vld [vmem:[%s208_s12 + $0x8] sm:$0xff]  ;;  %s449_s18 = sshll.u32 %s610_s22, 4  ;;  %s241_s19 = sld [smem:[#allocation4 + %s570_s25]] }
  0x30   : > { %447 = vst.msk [vmem:[%s591_s11 + $0x40] sm:$0xff] %vm175_vm0, %v209_v8  ;;  %448 = vst.msk [vmem:[%s591_s11 + $0x48] sm:$0xff] %vm175_vm0, %v210_v9  ;;  %s217_s20 = scalar_lea.vmem %s584_s8, %s449_s18  ;;  %s452_s24 = sshll.u32 %s224_s26, 4 }
  0x31   : > { %v218_v10 = vld [vmem:[%s217_s20] sm:$0xff]  ;;  %v219_v11 = vld [vmem:[%s217_s20 + $0x8] sm:$0xff]  ;;  %s226_s5 = scalar_lea.vmem %s584_s8, %s452_s24  ;;  %s248_s0 = sld [smem:[#allocation4 + %s178_s27]] }
  0x32   : > { %450 = vst.msk [vmem:[%s591_s11 + $0x50] sm:$0xff] %vm175_vm0, %v218_v10  ;;  %451 = vst.msk [vmem:[%s591_s11 + $0x58] sm:$0xff] %vm175_vm0, %v219_v11  ;;  %v227_v12 = vld [vmem:[%s226_s5] sm:$0xff]  ;;  %v228_v13 = vld [vmem:[%s226_s5 + $0x8] sm:$0xff]  ;;  %s256_s22 = sld [smem:[#allocation4 + %s187_s29]] }
  0x33   : > { %s658_s26 = sld [smem:[#allocation4 + %s196_s13]]  ;;  %453 = vst.msk [vmem:[%s591_s11 + $0x60] sm:$0xff] %vm175_vm0, %v227_v12  ;;  %454 = vst.msk [vmem:[%s591_s11 + $0x68] sm:$0xff] %vm175_vm0, %v228_v13  ;;  %s455_s27 = sshll.u32 %s233_s10, 4 }
  0x34   : > { %s666_s28 = sld [smem:[#allocation4 + %s205_s17]]  ;;  %s235_s30 = scalar_lea.vmem %s584_s8, %s455_s27 }
  0x35   : > { %s671_s6 = sld [smem:[#allocation4 + %s214_s21]]  ;;  %v236_v14 = vld [vmem:[%s235_s30] sm:$0xff]  ;;  %v237_v15 = vld [vmem:[%s235_s30 + $0x8] sm:$0xff]  ;;  %s458_s29 = sshll.u32 %s241_s19, 4 }
  0x36   : > { %s675_s13 = sld [smem:[#allocation4 + %s223_s23]]  ;;  %456 = vst.msk [vmem:[%s591_s11 + $0x70] sm:$0xff] %vm175_vm0, %v236_v14  ;;  %457 = vst.msk [vmem:[%s591_s11 + $0x78] sm:$0xff] %vm175_vm0, %v237_v15  ;;  %s243_s17 = scalar_lea.vmem %s584_s8, %s458_s29 }
  0x37   : > { %s684_s9 = sld [smem:[#allocation4 + %s232_s7]]  ;;  %v244_v16 = vld [vmem:[%s243_s17] sm:$0xff]  ;;  %v245_v17 = vld [vmem:[%s243_s17 + $0x8] sm:$0xff]  ;;  %s459_s21 = sshll.u32 %s248_s0, 4 }
  0x38   : > { %246 = vst.msk [vmem:[%s638_s16] sm:$0xff] %vm175_vm0, %v244_v16  ;;  %247 = vst.msk [vmem:[%s638_s16 + $0x8] sm:$0xff] %vm175_vm0, %v245_v17  ;;  %s250_s23 = scalar_lea.vmem %s584_s8, %s459_s21  ;;  %s462_s10 = sshll.u32 %s256_s22, 4 }
  0x39   : > { %v251_v18 = vld [vmem:[%s250_s23] sm:$0xff]  ;;  %v252_v19 = vld [vmem:[%s250_s23 + $0x8] sm:$0xff]  ;;  %s258_s25 = scalar_lea.vmem %s584_s8, %s462_s10  ;;  %s465_s11 = sshll.u32 %s658_s26, 4 }
  0x3a   : > { %460 = vst.msk [vmem:[%s638_s16 + $0x10] sm:$0xff] %vm175_vm0, %v251_v18  ;;  %461 = vst.msk [vmem:[%s638_s16 + $0x18] sm:$0xff] %vm175_vm0, %v252_v19  ;;  %v259_v20 = vld [vmem:[%s258_s25] sm:$0xff]  ;;  %v260_v21 = vld [vmem:[%s258_s25 + $0x8] sm:$0xff]  ;;  %s266_s7 = scalar_lea.vmem %s584_s8, %s465_s11  ;;  %s468_s12 = sshll.u32 %s666_s28, 4 }
  0x3b   : > { %463 = vst.msk [vmem:[%s638_s16 + $0x20] sm:$0xff] %vm175_vm0, %v259_v20  ;;  %464 = vst.msk [vmem:[%s638_s16 + $0x28] sm:$0xff] %vm175_vm0, %v260_v21  ;;  %v267_v22 = vld [vmem:[%s266_s7] sm:$0xff]  ;;  %v268_v23 = vld [vmem:[%s266_s7 + $0x8] sm:$0xff]  ;;  %s274_s14 = scalar_lea.vmem %s584_s8, %s468_s12  ;;  %s471_s15 = sshll.u32 %s671_s6, 4 }
  0x3c   : > { %466 = vst.msk [vmem:[%s638_s16 + $0x30] sm:$0xff] %vm175_vm0, %v267_v22  ;;  %467 = vst.msk [vmem:[%s638_s16 + $0x38] sm:$0xff] %vm175_vm0, %v268_v23  ;;  %v275_v24 = vld [vmem:[%s274_s14] sm:$0xff]  ;;  %v276_v25 = vld [vmem:[%s274_s14 + $0x8] sm:$0xff]  ;;  %s282_s18 = scalar_lea.vmem %s584_s8, %s471_s15  ;;  %s474_s19 = sshll.u32 %s675_s13, 4 }
  0x3d   : > { %469 = vst.msk [vmem:[%s638_s16 + $0x40] sm:$0xff] %vm175_vm0, %v275_v24  ;;  %470 = vst.msk [vmem:[%s638_s16 + $0x48] sm:$0xff] %vm175_vm0, %v276_v25  ;;  %v283_v26 = vld [vmem:[%s282_s18] sm:$0xff]  ;;  %v284_v27 = vld [vmem:[%s282_s18 + $0x8] sm:$0xff]  ;;  %s290_s20 = scalar_lea.vmem %s584_s8, %s474_s19  ;;  %s477_s24 = sshll.u32 %s684_s9, 4 }
  0x3e   : > { %472 = vst.msk [vmem:[%s638_s16 + $0x50] sm:$0xff] %vm175_vm0, %v283_v26  ;;  %473 = vst.msk [vmem:[%s638_s16 + $0x58] sm:$0xff] %vm175_vm0, %v284_v27  ;;  %v291_v28 = vld [vmem:[%s290_s20] sm:$0xff]  ;;  %v292_v29 = vld [vmem:[%s290_s20 + $0x8] sm:$0xff]  ;;  %s298_s5 = scalar_lea.vmem %s584_s8, %s477_s24 }
  0x3f   : > { %475 = vst.msk [vmem:[%s638_s16 + $0x60] sm:$0xff] %vm175_vm0, %v291_v28  ;;  %476 = vst.msk [vmem:[%s638_s16 + $0x68] sm:$0xff] %vm175_vm0, %v292_v29  ;;  %v299_v30 = vld [vmem:[%s298_s5] sm:$0xff]  ;;  %v300_v31 = vld [vmem:[%s298_s5 + $0x8] sm:$0xff] }
  0x40   : > { %478 = vst.msk [vmem:[%s638_s16 + $0x70] sm:$0xff] %vm175_vm0, %v299_v30  ;;  %479 = vst.msk [vmem:[%s638_s16 + $0x78] sm:$0xff] %vm175_vm0, %v300_v31 }
  0x41 PF: > { %s25_s1 = sadd.s32 1, %s527_s1  }
  0x42   : > { %p22_p0 = scmp.ge.s32.totalorder %s25_s1, 4  }
  0x44   :  { %24 = sbr.rel (!%p22_p0) target bundleno = 26 (0x1a), region = 96 }

</bundles_post_ra>
